<compile_context>
chip_gen: v5e
topology: v5e:2x2
jax: 0.10.0
libtpu: 0.0.40
codegen_flags: <defaults>
</compile_context>

<pallas_src>
import functools

import jax
import jax.numpy as jnp
from jax.experimental import pallas as pl
from jax.experimental.pallas import tpu as pltpu

_SQRT_2_OVER_PI = 0.7978845608028654


def _gelu_new(x):
    # GPT-2 "gelu_new" (tanh approximation), matching transformers NewGELUActivation.
    c = jnp.asarray(_SQRT_2_OVER_PI, dtype=x.dtype)
    k = jnp.asarray(0.044715, dtype=x.dtype)
    half = jnp.asarray(0.5, dtype=x.dtype)
    one = jnp.asarray(1.0, dtype=x.dtype)
    inner = c * (x * (one + k * (x * x)))        # == c * (x + k*x^3), one fewer vmul
    return half * x * (one + jnp.tanh(inner))


def _gpt2_mlp_kernel(x_ref, w_fc_ref, b_fc_ref, w_proj_ref, b_proj_ref,
                     o_ref, acc_ref, *, gelu_dtype):
    # x_ref:      (tm, D)   activation row tile (native/compute dtype)
    # w_fc_ref:   (D, ti)   c_fc weight slice for this intermediate tile
    # b_fc_ref:   (1, ti)   c_fc bias slice
    # w_proj_ref: (ti, D)   c_proj weight slice
    # b_proj_ref: (1, D)    c_proj bias
    # o_ref:      (tm, D)   output tile (resident across the k grid axis)
    # acc_ref:    (tm, D)   f32 accumulator scratch
    k = pl.program_id(1)

    @pl.when(k == 0)
    def _init():
        acc_ref[...] = jnp.zeros_like(acc_ref)

    # c_fc slice: native-dtype MXU matmul, f32 accumulation.
    h = jnp.dot(x_ref[...], w_fc_ref[...], preferred_element_type=jnp.float32)
    # bias add + gelu: bf16 on bf16-native VPU/EUP chips, f32 otherwise.
    h = h.astype(gelu_dtype) + b_fc_ref[...].astype(gelu_dtype)
    h = _gelu_new(h)

    # c_proj partial product: accumulate into the f32 scratch.
    acc_ref[...] += jnp.dot(h.astype(w_proj_ref.dtype), w_proj_ref[...],
                            preferred_element_type=jnp.float32)

    @pl.when(k == pl.num_programs(1) - 1)
    def _finalize():
        o_ref[...] = (acc_ref[...] +
                      b_proj_ref[...].astype(jnp.float32)).astype(o_ref.dtype)


def _round_up(x, m):
    return (x + m - 1) // m * m


def _chip_profile():
    """Return (tm_default, vmem_budget_bytes, bf16_vpu, two_cores) for the local TPU."""
    kind = ""
    try:
        kind = jax.devices()[0].device_kind.lower()
    except Exception:
        pass
    mib = 1024 * 1024
    if "v7" in kind or "7x" in kind:
        # 64 MiB physical VMEM per TensorCore, 2 TCs per chip.
        return 512, 48 * mib, True, True
    if "v6" in kind:
        return 1024, 96 * mib, True, False
    if "v5" in kind or "v4" in kind or "v3" in kind or "v2" in kind:
        # No bf16 VPU/EUP on v5e and older: keep gelu/bias-add in f32 there.
        return 512, 96 * mib, False, False
    # Unknown / future chip: conservative (v7x-like) assumptions.
    return 512, 48 * mib, True, True


def _vmem_bytes(tm, ti, D, in_bytes, out_bytes):
    """Rough VMEM footprint for one grid step (double-buffered tiles + scratch)."""
    x_t = 2 * tm * D * in_bytes                # activation row tile
    w_t = 2 * (D * ti + ti * D) * in_bytes     # c_fc + c_proj weight slices
    b_t = 2 * (ti + D) * in_bytes              # biases
    o_t = 2 * tm * D * out_bytes               # output tile
    acc = tm * D * 4                           # f32 accumulator scratch
    h_t = tm * ti * 4                          # gelu intermediate (worst case f32)
    return x_t + w_t + b_t + o_t + acc + h_t


def _choose_tiles(M, D, I, in_bytes, out_bytes, tm_req, vmem_budget, two_cores):
    """Pick (row_tile, intermediate_tile) under the per-generation VMEM budget."""
    row_align = 16 if in_bytes < 4 else 8      # bf16 sublane packing prefers 16
    tm = min(tm_req, _round_up(M, row_align))
    tm = max(row_align, _round_up(tm, row_align))
    # Keep at least 2 row tiles so v7x's two TensorCores both get work.
    if two_cores:
        while pl.cdiv(M, tm) < 2 and tm > 256:
            tm = max(256, _round_up(tm // 2, row_align))

    def pick_ti(tm_):
        # Prefer the full intermediate dim (weights stay resident across the
        # whole grid -> single HBM read of both weight matrices); otherwise the
        # largest 128-multiple divisor of I that fits the budget.
        cands = [I] + [c for c in range(min(I - 1, 8192) // 128 * 128, 0, -128)
                       if I % c == 0]
        for c in cands:
            if _vmem_bytes(tm_, c, D, in_bytes, out_bytes) <= vmem_budget:
                return c
        return None

    ti = pick_ti(tm)
    while ti is None and tm > row_align:
        tm = max(row_align, _round_up(tm // 2, row_align))
        ti = pick_ti(tm)
    if ti is None:
        # Last resort (pathological shapes): smallest legal tile, let the
        # compiler deal with any spill.
        ti = 128 if I % 128 == 0 else I
    return tm, ti


@functools.partial(jax.jit, static_argnames=("tm", "compute_dtype"))
def gpt2_mlp(hidden_states, w_fc, b_fc, w_proj, b_proj, *, tm=None,
             compute_dtype=None):
    """GPT2MLP forward: c_fc -> gelu_new -> c_proj. (B, S, D) -> (B, S, D)."""
    B, S, D = hidden_states.shape
    I = w_fc.shape[1]
    M = B * S
    out_dtype = hidden_states.dtype

    tm_default, vmem_budget, bf16_vpu, two_cores = _chip_profile()
    tm_req = tm if tm is not None else tm_default

    x = hidden_states.reshape(M, D)
    if compute_dtype is not None:
        x = x.astype(compute_dtype)
        w_fc = w_fc.astype(compute_dtype)
        b_fc = b_fc.astype(compute_dtype)
        w_proj = w_proj.astype(compute_dtype)
        b_proj = b_proj.astype(compute_dtype)

    in_bytes = x.dtype.itemsize
    out_bytes = jnp.dtype(out_dtype).itemsize
    tm_eff, ti = _choose_tiles(M, D, I, in_bytes, out_bytes, tm_req,
                               vmem_budget, two_cores)
    n_rows = pl.cdiv(M, tm_eff)      # masked last row tile if M % tm_eff != 0
    n_k = pl.cdiv(I, ti)             # ti always divides I by construction

    # gelu / bias-add precision: bf16 only where the VPU/EUP are bf16-native
    # and the matmul path is already bf16; f32 everywhere else.
    gelu_dtype = (jnp.bfloat16
                  if (bf16_vpu and x.dtype == jnp.bfloat16) else jnp.float32)

    b_fc2 = b_fc.reshape(1, I)
    b_proj2 = b_proj.reshape(1, D)

    nbytes = lambda a: a.size * a.dtype.itemsize
    weight_reads = 1 if ti == I else n_rows   # resident weights: read once
    cost = pl.CostEstimate(
        flops=4 * (n_rows * tm_eff) * D * I,              # two matmuls
        transcendentals=(n_rows * tm_eff) * I,            # tanh in gelu_new
        bytes_accessed=(nbytes(x) + M * D * out_bytes
                        + weight_reads * (nbytes(w_fc) + nbytes(w_proj))
                        + weight_reads * nbytes(b_fc2) + nbytes(b_proj2)),
    )

    kernel = functools.partial(_gpt2_mlp_kernel, gelu_dtype=gelu_dtype)

    out = pl.pallas_call(
        kernel,
        out_shape=jax.ShapeDtypeStruct((M, D), out_dtype),
        grid_spec=pltpu.PrefetchScalarGridSpec(
            num_scalar_prefetch=0,
            grid=(n_rows, n_k),
            in_specs=[
                pl.BlockSpec((tm_eff, D), lambda i, k: (i, 0)),  # x row tile
                pl.BlockSpec((D, ti), lambda i, k: (0, k)),      # c_fc W slice
                pl.BlockSpec((1, ti), lambda i, k: (0, k)),      # c_fc b slice
                pl.BlockSpec((ti, D), lambda i, k: (k, 0)),      # c_proj W slice
                pl.BlockSpec((1, D), lambda i, k: (0, 0)),       # c_proj b
            ],
            out_specs=pl.BlockSpec((tm_eff, D), lambda i, k: (i, 0)),
            scratch_shapes=[pltpu.VMEM((tm_eff, D), jnp.float32)],
        ),
        compiler_params=pltpu.CompilerParams(
            dimension_semantics=("parallel", "arbitrary"),
            vmem_limit_bytes=int(vmem_budget),
        ),
        cost_estimate=cost,
    )(x, w_fc, b_fc2, w_proj, b_proj2)

    return out.reshape(B, S, D)


if __name__ == "__main__":
    # Small GPT2-like config: hidden=32, intermediate=4*hidden=128, batch=2, seq=8.
    # (Real GPT-2 has D >= 768, which takes the lane-dense / resident-weight path.)
    batch, seq, hidden = 2, 8, 32
    intermediate = 4 * hidden

    key = jax.random.PRNGKey(0)
    k_x, k_wfc, k_bfc, k_wproj, k_bproj = jax.random.split(key, 5)

    x = jax.random.normal(k_x, (batch, seq, hidden), dtype=jnp.float32)
    w_fc = 0.02 * jax.random.normal(k_wfc, (hidden, intermediate), dtype=jnp.float32)
    b_fc = 0.01 * jax.random.normal(k_bfc, (intermediate,), dtype=jnp.float32)
    w_proj = 0.02 * jax.random.normal(k_wproj, (intermediate, hidden), dtype=jnp.float32)
    b_proj = 0.01 * jax.random.normal(k_bproj, (hidden,), dtype=jnp.float32)

    def ref_mlp(xx):
        h = xx.reshape(-1, hidden) @ w_fc + b_fc
        h = 0.5 * h * (1.0 + jnp.tanh(jnp.sqrt(2.0 / jnp.pi) *
                                      (h + 0.044715 * h ** 3)))
        return (h @ w_proj + b_proj).reshape(xx.shape)

    # 1) f32 path (matches the module's default numerics).
    out = jax.block_until_ready(gpt2_mlp(x, w_fc, b_fc, w_proj, b_proj))
    ref = ref_mlp(x)
    assert out.shape == ref.shape and out.dtype == ref.dtype
    assert jnp.allclose(out, ref, atol=2e-3, rtol=1e-2), "f32 mismatch vs reference"

    # 2) ragged row count: exercises the masked last row tile (no jnp.pad path).
    x_rag = jax.random.normal(k_x, (3, 5, hidden), dtype=jnp.float32)
    out_rag = jax.block_until_ready(gpt2_mlp(x_rag, w_fc, b_fc, w_proj, b_proj))
    assert jnp.allclose(out_rag, ref_mlp(x_rag), atol=2e-3, rtol=1e-2), \
        "ragged-M mismatch vs reference"

    # 3) bf16 compute path for f32 checkpoints (looser tolerance).
    out_bf16 = jax.block_until_ready(
        gpt2_mlp(x, w_fc, b_fc, w_proj, b_proj, compute_dtype=jnp.bfloat16))
    assert out_bf16.dtype == jnp.float32
    assert jnp.allclose(out_bf16, ref, atol=5e-3, rtol=5e-2), \
        "bf16 compute-path mismatch vs reference"

    print("KERNEL_OK")
</pallas_src>

<mosaic_0001>
module attributes {stable_mosaic.version = 11 : i64} {
  func.func @_gpt2_mlp_kernel(%arg0: i32, %arg1: i32, %arg2: memref<16x32xf32, #tpu.memory_space<vmem>>, %arg3: memref<32x128xf32, #tpu.memory_space<vmem>>, %arg4: memref<1x128xf32, #tpu.memory_space<vmem>>, %arg5: memref<128x32xf32, #tpu.memory_space<vmem>>, %arg6: memref<1x32xf32, #tpu.memory_space<vmem>>, %arg7: memref<16x32xf32, #tpu.memory_space<vmem>>, %arg8: memref<16x32xf32, #tpu.memory_space<vmem>>) attributes {dimension_semantics = [#tpu.dimension_semantics<parallel>, #tpu.dimension_semantics<arbitrary>], iteration_bounds = array<i64: 1, 1>, scalar_prefetch = 0 : i64, scratch_operands = 1 : i64, tpu.core_type = #tpu.core_type<tc>, window_params = [{transform_indices = @transform_0, window_bounds = array<i64: 16, 32>}, {transform_indices = @transform_1, window_bounds = array<i64: 32, 128>}, {transform_indices = @transform_2, window_bounds = array<i64: 1, 128>}, {transform_indices = @transform_3, window_bounds = array<i64: 128, 32>}, {pipeline_mode = #tpu.pipeline_mode<synchronous>, transform_indices = @transform_4, window_bounds = array<i64: 1, 32>}, {transform_indices = @transform_5, window_bounds = array<i64: 16, 32>}]} {
    %c0_i32 = arith.constant 0 : i32
    %0 = arith.cmpi eq, %arg1, %c0_i32 : i32
    %1 = arith.extui %0 : i1 to i32
    %c0_i32_0 = arith.constant 0 : i32
    %2 = arith.cmpi ne, %1, %c0_i32_0 : i32
    scf.if %2 {
      %cst_20 = arith.constant 0.000000e+00 : f32
      %31 = vector.broadcast %cst_20 : f32 to vector<16x32xf32>
      %c0_21 = arith.constant 0 : index
      %c0_22 = arith.constant 0 : index
      %32 = vector.load %arg8[%c0_21, %c0_22] : memref<16x32xf32, #tpu.memory_space<vmem>>, vector<16x32xf32>
      tpu.vector_store %arg8[%c0_21, %c0_22], %31 {strides = array<i32>} : memref<16x32xf32, #tpu.memory_space<vmem>>, vector<16x32xf32>,
    } else {
    }
    %c0 = arith.constant 0 : index
    %c0_1 = arith.constant 0 : index
    %3 = vector.load %arg2[%c0, %c0_1] : memref<16x32xf32, #tpu.memory_space<vmem>>, vector<16x32xf32>
    %c0_2 = arith.constant 0 : index
    %c0_3 = arith.constant 0 : index
    %4 = vector.load %arg3[%c0_2, %c0_3] : memref<32x128xf32, #tpu.memory_space<vmem>>, vector<32x128xf32>
    %cst = arith.constant dense<0.000000e+00> : vector<16x128xf32>
    %5 = tpu.matmul %3, %4, %cst {dimension_numbers = #tpu.dot_dimension_numbers<[1], [0], [0], [1], [0, 0, 1, 1], [], []>} : vector<16x32xf32>, vector<32x128xf32>, vector<16x128xf32> -> vector<16x128xf32>
    %c0_4 = arith.constant 0 : index
    %c0_5 = arith.constant 0 : index
    %6 = vector.load %arg4[%c0_4, %c0_5] : memref<1x128xf32, #tpu.memory_space<vmem>>, vector<1x128xf32>
    %7 = vector.broadcast %6 : vector<1x128xf32> to vector<16x128xf32>
    %8 = arith.addf %5, %7 : vector<16x128xf32>
    %9 = arith.mulf %8, %8 : vector<16x128xf32>
    %cst_6 = arith.constant 4.471500e-02 : f32
    %10 = vector.broadcast %cst_6 : f32 to vector<16x128xf32>
    %11 = arith.mulf %10, %9 : vector<16x128xf32>
    %cst_7 = arith.constant 1.000000e+00 : f32
    %12 = vector.broadcast %cst_7 : f32 to vector<16x128xf32>
    %13 = arith.addf %12, %11 : vector<16x128xf32>
    %14 = arith.mulf %8, %13 : vector<16x128xf32>
    %cst_8 = arith.constant 0.797884583 : f32
    %15 = vector.broadcast %cst_8 : f32 to vector<16x128xf32>
    %16 = arith.mulf %15, %14 : vector<16x128xf32>
    %cst_9 = arith.constant 5.000000e-01 : f32
    %17 = vector.broadcast %cst_9 : f32 to vector<16x128xf32>
    %18 = arith.mulf %17, %8 : vector<16x128xf32>
    %19 = math.tanh %16 : vector<16x128xf32>
    %cst_10 = arith.constant 1.000000e+00 : f32
    %20 = vector.broadcast %cst_10 : f32 to vector<16x128xf32>
    %21 = arith.addf %20, %19 : vector<16x128xf32>
    %22 = arith.mulf %18, %21 : vector<16x128xf32>
    %c0_11 = arith.constant 0 : index
    %c0_12 = arith.constant 0 : index
    %23 = vector.load %arg8[%c0_11, %c0_12] : memref<16x32xf32, #tpu.memory_space<vmem>>, vector<16x32xf32>
    %c0_13 = arith.constant 0 : index
    %c0_14 = arith.constant 0 : index
    %24 = vector.load %arg5[%c0_13, %c0_14] : memref<128x32xf32, #tpu.memory_space<vmem>>, vector<128x32xf32>
    %cst_15 = arith.constant dense<0.000000e+00> : vector<16x32xf32>
    %25 = tpu.matmul %22, %24, %cst_15 {dimension_numbers = #tpu.dot_dimension_numbers<[1], [0], [0], [1], [0, 0, 1, 1], [], []>} : vector<16x128xf32>, vector<128x32xf32>, vector<16x32xf32> -> vector<16x32xf32>
    %26 = arith.addf %23, %25 : vector<16x32xf32>
    %c0_16 = arith.constant 0 : index
    %c0_17 = arith.constant 0 : index
    %27 = vector.load %arg8[%c0_16, %c0_17] : memref<16x32xf32, #tpu.memory_space<vmem>>, vector<16x32xf32>
    tpu.vector_store %arg8[%c0_16, %c0_17], %26 {strides = array<i32>} : memref<16x32xf32, #tpu.memory_space<vmem>>, vector<16x32xf32>,
    %c0_i32_18 = arith.constant 0 : i32
    %28 = arith.cmpi eq, %arg1, %c0_i32_18 : i32
    %29 = arith.extui %28 : i1 to i32
    %c0_i32_19 = arith.constant 0 : i32
    %30 = arith.cmpi ne, %29, %c0_i32_19 : i32
    scf.if %30 {
      %c0_20 = arith.constant 0 : index
      %c0_21 = arith.constant 0 : index
      %31 = vector.load %arg8[%c0_20, %c0_21] : memref<16x32xf32, #tpu.memory_space<vmem>>, vector<16x32xf32>
      %c0_22 = arith.constant 0 : index
      %c0_23 = arith.constant 0 : index
      %32 = vector.load %arg6[%c0_22, %c0_23] : memref<1x32xf32, #tpu.memory_space<vmem>>, vector<1x32xf32>
      %33 = vector.broadcast %32 : vector<1x32xf32> to vector<16x32xf32>
      %34 = arith.addf %31, %33 : vector<16x32xf32>
      %c0_24 = arith.constant 0 : index
      %c0_25 = arith.constant 0 : index
      %35 = vector.load %arg7[%c0_24, %c0_25] : memref<16x32xf32, #tpu.memory_space<vmem>>, vector<16x32xf32>
      tpu.vector_store %arg7[%c0_24, %c0_25], %34 {strides = array<i32>} : memref<16x32xf32, #tpu.memory_space<vmem>>, vector<16x32xf32>,
    } else {
    }
    return
  }
  func.func @transform_0(%arg0: i32, %arg1: i32) -> (i32, i32) {
    %c0_i32 = arith.constant 0 : i32
    %c0_i32_0 = arith.constant 0 : i32
    return %arg0, %c0_i32 : i32, i32
  }
  func.func @transform_1(%arg0: i32, %arg1: i32) -> (i32, i32) {
    %c0_i32 = arith.constant 0 : i32
    %c0_i32_0 = arith.constant 0 : i32
    return %c0_i32, %arg1 : i32, i32
  }
  func.func @transform_2(%arg0: i32, %arg1: i32) -> (i32, i32) {
    %c0_i32 = arith.constant 0 : i32
    %c0_i32_0 = arith.constant 0 : i32
    return %c0_i32, %arg1 : i32, i32
  }
  func.func @transform_3(%arg0: i32, %arg1: i32) -> (i32, i32) {
    %c0_i32 = arith.constant 0 : i32
    %c0_i32_0 = arith.constant 0 : i32
    return %arg1, %c0_i32 : i32, i32
  }
  func.func @transform_4(%arg0: i32, %arg1: i32) -> (i32, i32) {
    %c0_i32 = arith.constant 0 : i32
    %c0_i32_0 = arith.constant 0 : i32
    %c0_i32_1 = arith.constant 0 : i32
    return %c0_i32, %c0_i32_0 : i32, i32
  }
  func.func @transform_5(%arg0: i32, %arg1: i32) -> (i32, i32) {
    %c0_i32 = arith.constant 0 : i32
    %c0_i32_0 = arith.constant 0 : i32
    return %arg0, %c0_i32 : i32, i32
  }
}

</mosaic_0001>

<bundles_post_ra>
// kernel: gpt2_mlp.1
= control target key start
LH: loop header
LB: loop body
LE: loop exit
PB: predicated region body
PF: predicated region fallthrough
CT: control target
= control target key end

     0   :  { %s333_s0 = inlined_call_operand.vmem [shape: f32[16,32], index: 0, kind: input, shape index: {}]   ;;  %s334_s1 = inlined_call_operand.vmem [shape: f32[32,128], index: 1, kind: input, shape index: {}]   ;;  %s335_s2 = inlined_call_operand.vmem [shape: f32[1,128], index: 2, kind: input, shape index: {}]   ;;  %s336_s3 = inlined_call_operand.vmem [shape: f32[128,32], index: 3, kind: input, shape index: {}]   ;;  %s337_s4 = inlined_call_operand.vmem [shape: f32[1,32], index: 4, kind: input, shape index: {}]   ;;  %s338_s5 = inlined_call_operand.hbm [shape: f32[16,32], index: 5, kind: output, shape index: {}]  }
   0x1   :  { %v33_v0 = vld [vmem:[%s334_s1 + $0x18] sm:$0xff]  ;;  %v32_v1 = vld [vmem:[%s334_s1 + $0x10] sm:$0xff]  ;;  %v31_v2 = vld [vmem:[%s334_s1 + $0x8] sm:$0xff] }
   0x2   :  { %57 = vmatpush.msra.mxu0 %v33_v0  ;;  %v103_v3 = vld [vmem:[%s336_s3 + $0x78] sm:$0xff]  ;;  %v102_v4 = vld [vmem:[%s336_s3 + $0x70] sm:$0xff]  ;;  %v30_v5 = vld [vmem:[%s334_s1] sm:$0xff] }
   0x3   :  { %104 = vmatpush.msra.mxu1 %v103_v3  ;;  %v101_v6 = vld [vmem:[%s336_s3 + $0x68] sm:$0xff]  ;;  %164 = vmatpush.msra.mxu2 %v103_v3 }
   0x4   :  { %58 = vmatpush.msra.mxu0 %v32_v1 }
   0x5   :  { %10 = vsyncpa [#allocation4], 0  ;;  %vm25_vm0 = vcmask 261120   ;;  %v28_v7 = vld [vmem:[%s333_s0] sm:$0xff]  ;;  %105 = vmatpush.msra.mxu1 %v102_v4  ;;  %165 = vmatpush.msra.mxu2 %v102_v4  ;;  %v29_v9 = vld [vmem:[%s333_s0 + $0x8] sm:$0xff]  ;;  %v216_v25 = vmov 0.0  }
   0x6   :  { %59 = vmatpush.msra.mxu0 %v31_v2  ;;  %v100_v8 = vld [vmem:[%s336_s3 + $0x60] sm:$0xff]  ;;  %v99_v10 = vld [vmem:[%s336_s3 + $0x58] sm:$0xff]  ;;  %v98_v11 = vld [vmem:[%s336_s3 + $0x50] sm:$0xff]  ;;  %26 = vst.msk [vmem:[#allocation2] sm:$0xff] %vm25_vm0, %v216_v25  ;;  %s217_s11 = smov [#allocation3]   ;;  %s150_s15 = sshll.u32 %s338_s5, 4  ;;  %s151_s15 = int_to_ptr.hbm [resolvable:$true] %s150_s15 }
   0x7   :  { %106 = vmatpush.msra.mxu1 %v101_v6  ;;  %166 = vmatpush.msra.mxu2 %v101_v6  ;;  %v97_v12 = vld [vmem:[%s336_s3 + $0x48] sm:$0xff]  ;;  %v96_v13 = vld [vmem:[%s336_s3 + $0x40] sm:$0xff]  ;;  %v95_v14 = vld [vmem:[%s336_s3 + $0x38] sm:$0xff]  ;;  %27 = vst.msk [vmem:[#allocation2 + $0x8] sm:$0xff] %vm25_vm0, %v216_v25  ;;  %s148_s12 = sshll.u32 %s217_s11, 4  ;;  %s219_s16 = smov 8   ;;  %s149_s12 = int_to_ptr.vmem [resolvable:$true] %s148_s12 }
   0x8   :  { %60 = vmatpush.msra.mxu0 %v30_v5  ;;  %v94_v15 = vld [vmem:[%s336_s3 + $0x30] sm:$0xff]  ;;  %v93_v16 = vld [vmem:[%s336_s3 + $0x28] sm:$0xff]  ;;  %v92_v17 = vld [vmem:[%s336_s3 + $0x20] sm:$0xff] }
   0x9   :  { %162 = vmatmul.msk.f32.vlgmr.msra.gmra.mxu0 %vm25_vm0, %v28_v7  ;;  %107 = vmatpush.msra.mxu1 %v100_v8  ;;  %v91_v18 = vld [vmem:[%s336_s3 + $0x18] sm:$0xff]  ;;  %v90_v19 = vld [vmem:[%s336_s3 + $0x10] sm:$0xff]  ;;  %v89_v20 = vld [vmem:[%s336_s3 + $0x8] sm:$0xff] }
   0xa   :  { %167 = vmatpush.msra.mxu2 %v100_v8  ;;  %v88_v21 = vld [vmem:[%s336_s3] sm:$0xff] }
   0xb   :  { %108 = vmatpush.msra.mxu1 %v99_v10  ;;  %v184_v22 = vld [vmem:[%s335_s2] ss:$0 sm:$0xff] }
   0xc   :  { %168 = vmatpush.msra.mxu2 %v99_v10  ;;  %v185_v49 = vld [vmem:[%s337_s4] ss:$0 sm:$0xff]  ;;  %s218_s4 = smov 128  }
   0xd   :  { %109 = vmatpush.msra.mxu1 %v98_v11  ;;  %v86_v46 = vld [vmem:[#allocation2] sm:$0xff] }
   0xe   :  { %169 = vmatpush.msra.mxu2 %v98_v11  ;;  %v87_v52 = vld [vmem:[#allocation2 + $0x8] sm:$0xff] }
   0xf   :  { %110 = vmatpush.msra.mxu1 %v97_v12 }
  0x10   :  { %170 = vmatpush.msra.mxu2 %v97_v12 }
  0x11   :  { %163 = vmatmul.msk.f32.gmra.mxu0 %vm25_vm0, %v29_v9  ;;  %111 = vmatpush.msra.mxu1 %v96_v13 }
  0x12   :  { %171 = vmatpush.msra.mxu2 %v96_v13 }
  0x13   :  { %112 = vmatpush.msra.mxu1 %v95_v14 }
  0x14   :  { %172 = vmatpush.msra.mxu2 %v95_v14 }
  0x15   :  { %113 = vmatpush.msra.mxu1 %v94_v15 }
  0x16   :  { %173 = vmatpush.msra.mxu2 %v94_v15 }
  0x17   :  { %114 = vmatpush.msra.mxu1 %v93_v16 }
  0x18   :  { %174 = vmatpush.msra.mxu2 %v93_v16 }
  0x19   :  { %115 = vmatpush.msra.mxu1 %v92_v17 }
  0x1a   :  { %175 = vmatpush.msra.mxu2 %v92_v17 }
  0x1b   :  { %116 = vmatpush.msra.mxu1 %v91_v18 }
  0x1c   :  { %176 = vmatpush.msra.mxu2 %v91_v18 }
  0x1d   :  { %117 = vmatpush.msra.mxu1 %v90_v19 }
  0x1e   :  { %177 = vmatpush.msra.mxu2 %v90_v19 }
  0x1f   :  { %118 = vmatpush.msra.mxu1 %v89_v20 }
  0x20   :  { %178 = vmatpush.msra.mxu2 %v89_v20 }
  0x21   :  { %119 = vmatpush.msra.mxu1 %v88_v21 }
  0x22   :  { %179 = vmatpush.msra.mxu2 %v88_v21 }
  0x86   :  { %v62_v23 = vpop.f32.mrf.mxu0 }
  0x87   :  { %v63_v24 = vadd.f32 %v184_v22, %v62_v23 }
  0x89   :  { %v68_v26 = vmul.f32 %v63_v24, %v63_v24  ;;  %v78_v39 = vmul.f32 0.5, %v63_v24 }
  0x8b   :  { %v70_v27 = vmul.f32 0.044715, %v68_v26 }
  0x8d   :  { %v72_v28 = vadd.f32 1.0, %v70_v27 }
  0x8e   :  { %v65_v29 = vpop.f32.mrf.mxu0 }
  0x8f   :  { %v74_v30 = vmul.f32 %v72_v28, %v63_v24  ;;  %v66_v31 = vadd.f32 %v184_v22, %v65_v29 }
  0x91   :  { %v76_v32 = vmul.f32 0.7978846, %v74_v30  ;;  %v69_v33 = vmul.f32 %v66_v31, %v66_v31  ;;  %v79_v43 = vmul.f32 0.5, %v66_v31 }
  0x93   :  { %v71_v34 = vmul.f32 0.044715, %v69_v33  ;;  %186 = vtanh.f32 %v76_v32 }
  0x95   :  { %v73_v35 = vadd.f32 1.0, %v71_v34 }
  0x97   :  { %v75_v36 = vmul.f32 %v73_v35, %v66_v31 }
  0x99   :  { %v187_v37 = vpop.eup %186  ;;  %v77_v38 = vmul.f32 0.7978846, %v75_v36 }
  0x9a   :  { %v82_v40 = vadd.f32 1.0, %v187_v37 }
  0x9b   :  { %188 = vtanh.f32 %v77_v38 }
  0x9c   :  { %v84_v41 = vmul.f32 %v82_v40, %v78_v39 }
  0x9e   :  { %120 = vmatmul.f32.vlgmr.msra.gmra.mxu1 %v84_v41 }
  0xa1   :  { %v189_v42 = vpop.eup %188 }
  0xa2   :  { %v83_v44 = vadd.f32 1.0, %v189_v42 }
  0xa4   :  { %v85_v45 = vmul.f32 %v83_v44, %v79_v43 }
  0xa6   :  { %123 = vmatmul.f32.vlgmr.msra.gmra.mxu2 %v85_v45 }
 0x11b   :  { %v121_v47 = vpop.f32.mrf.mxu1 }
 0x11c   :  { %v127_v48 = vadd.f32 %v121_v47, %v86_v46 }
 0x11e   :  { %129 = vst.msk [vmem:[#allocation2] sm:$0xff] %vm25_vm0, %v127_v48 }
 0x125   :  { %v134_v50 = vld [vmem:[#allocation2] sm:$0xff] }
 0x126   :  { %v140_v51 = vadd.f32 %v185_v49, %v134_v50 }
 0x128   :  { %142 = vst.msk [vmem:[#allocation3] sm:$0xff] %vm25_vm0, %v140_v51 }
 0x129   :  { %v124_v53 = vpop.f32.mrf.mxu2 }
 0x12a   :  { %v128_v54 = vadd.f32 %v124_v53, %v87_v52 }
 0x12c   :  { %130 = vst.msk [vmem:[#allocation2 + $0x8] sm:$0xff] %vm25_vm0, %v128_v54 }
 0x133   :  { %v135_v55 = vld [vmem:[#allocation2 + $0x8] sm:$0xff] }
 0x134   :  { %v141_v56 = vadd.f32 %v185_v49, %v135_v55 }
 0x136   :  { %143 = vst.msk [vmem:[#allocation3 + $0x8] sm:$0xff] %vm25_vm0, %v141_v56 }
 0x137   :  { %156 = dma.vmem_to_hbm [thread:$0]  %s149_s12, 256, %s151_s15, [#allocation4], %s218_s4, %s218_s4, %s219_s16  }
 0x138   :  { %214 = dma.done.wait [#allocation4], 256  }
 0x139   :  { %215 = vsyncadd [#allocation4], 4294967040 }
 0x13a   :  { %161 = vsyncpa [#allocation4], 1 }

</bundles_post_ra>
